<compile_context>
chip_gen: v6e
topology: v6e:2x2x1
jax: 0.10.0
libtpu: 0.0.40
codegen_flags: <defaults>
</compile_context>

<pallas_src>
import functools

import jax
import jax.numpy as jnp
from jax.experimental import pallas as pl
from jax.experimental.pallas import tpu as pltpu


_VMEM_BUDGET = 40 * 1024 * 1024   # double-buffered working-set cap (v7x safe)
_VMEM_LIMIT_CAP = 48 * 1024 * 1024


def _round_up(x, m):
    return ((x + m - 1) // m) * m


def _apply_act(y, act_func):
    if act_func is None or act_func == "none":
        return y
    if act_func == "relu":
        return jnp.maximum(y, 0.0)
    if act_func == "relu6":
        return jnp.clip(y, 0.0, 6.0)
    if act_func == "tanh":
        return jnp.tanh(y)
    if act_func == "sigmoid":
        return jax.nn.sigmoid(y)
    if act_func == "h_sigmoid":
        return jnp.clip(y + 3.0, 0.0, 6.0) / 6.0
    if act_func == "h_swish":
        return y * (jnp.clip(y + 3.0, 0.0, 6.0) / 6.0)
    if act_func == "swish":
        return y * jax.nn.sigmoid(y)
    raise ValueError("do not support: %s" % act_func)


def _is_dual_core_tc():
    """True on chips whose TensorCores are sharded over 'parallel' grid axes."""
    try:
        return "v7" in jax.devices()[0].device_kind.lower()
    except Exception:  # pragma: no cover - best effort only
        return False


def _linear_kernel(x_ref, w_ref, *rest, act_func, use_bias, fuse_out):
    """x: [tm, tk]; w: [tk, tn] (pre-transposed); out: [tm, tn]."""
    if fuse_out:
        if use_bias:
            b_ref, o_ref = rest
        else:
            (o_ref,) = rest
            b_ref = None
        acc_ref = o_ref                      # f32 output doubles as accumulator
    else:
        if use_bias:
            b_ref, o_ref, acc_ref = rest
        else:
            o_ref, acc_ref = rest
            b_ref = None

    k = pl.program_id(2)

    @pl.when(k == 0)
    def _():
        acc_ref[...] = jnp.zeros_like(acc_ref)

    acc_ref[...] += jnp.dot(x_ref[...], w_ref[...],
                            preferred_element_type=jnp.float32)

    needs_epilogue = use_bias or (act_func not in (None, "none")) or not fuse_out
    if needs_epilogue:
        @pl.when(k == pl.num_programs(2) - 1)
        def _():
            y = acc_ref[...]
            if use_bias:
                y = y + b_ref[...]           # bias kept in f32; broadcast [1, tn]
            y = _apply_act(y, act_func)
            o_ref[...] = y.astype(o_ref.dtype)


class PallasLinearLayer:
    """Pallas equivalent of LinearLayer (eval mode).

    weight: [out_features, in_features] (PyTorch layout), bias: [out_features]
    or None.  Weight is transposed / cast / padded ONCE here.
    """

    def __init__(self, weight, bias=None, act_func=None, compute_dtype=None,
                 tm_max=512, tn_max=512, tk_max=2048):
        out_f, in_f = weight.shape
        self.in_features = int(in_f)
        self.out_features = int(out_f)
        self.act_func = act_func
        self.compute_dtype = compute_dtype
        self.use_bias = bias is not None
        self.tm_max = tm_max

        in_dtype = jnp.dtype(compute_dtype) if compute_dtype else jnp.dtype(weight.dtype)
        self._in_itemsize = in_dtype.itemsize
        self._sublane_mult = 16 if self._in_itemsize == 2 else (32 if self._in_itemsize == 1 else 8)

        # --- static N / K tile selection (bounded by a v7x-safe VMEM budget) ---
        tn = min(tn_max, _round_up(out_f, 128))
        tk = min(tk_max, _round_up(in_f, 128))

        def ws_bytes(tk_, tn_):
            b = 2 * (tm_max * tk_ + tk_ * tn_) * self._in_itemsize   # dbl-buf inputs
            b += 3 * tm_max * tn_ * 4                                # out bufs + acc (worst case)
            return b

        while ws_bytes(tk, tn) > _VMEM_BUDGET and tk > 512:
            tk = _round_up(tk // 2, 128)
        while ws_bytes(tk, tn) > _VMEM_BUDGET and tn > 256:
            tn = _round_up(tn // 2, 128)
        self.tn, self.tk = tn, tk

        # --- one-time weight prep: cast -> transpose -> pad ---
        Np, Kp = _round_up(out_f, tn), _round_up(in_f, tk)
        self.Np, self.Kp = Np, Kp
        w = weight.astype(compute_dtype) if compute_dtype is not None else weight
        w = w.T                                                  # [in_f, out_f]
        if (Kp, Np) != (in_f, out_f):
            w = jnp.pad(w, ((0, Kp - in_f), (0, Np - out_f)))
        self.weight_t = jax.block_until_ready(w)

        if self.use_bias:
            b = bias.astype(jnp.float32)                         # f32 epilogue
            if Np != out_f:
                b = jnp.pad(b, (0, Np - out_f))
            self.bias2d = jax.block_until_ready(b.reshape(1, Np))
        else:
            self.bias2d = None

        self._dual_core = _is_dual_core_tc()

    # ---------------------------------------------------------------- call --
    def _choose_tm(self, B):
        if B <= 128:
            return max(self._sublane_mult, _round_up(B, self._sublane_mult))
        best_mp, best_tm = None, None
        for c in (128, 256, 512):
            if c > self.tm_max:
                continue
            mp = _round_up(B, c)
            if best_mp is None or (mp, -c) < (best_mp, -best_tm):
                best_mp, best_tm = mp, c
        return best_tm

    def __call__(self, x):
        B, in_f = x.shape
        assert in_f == self.in_features
        out_dtype = x.dtype
        out_f, Np, Kp = self.out_features, self.Np, self.Kp
        tn, tk = self.tn, self.tk

        if self.compute_dtype is not None:
            x = x.astype(self.compute_dtype)

        tm = self._choose_tm(B)
        Mp = _round_up(B, tm)
        if (Mp, Kp) != (B, in_f):
            x = jnp.pad(x, ((0, Mp - B), (0, Kp - in_f)))

        # Keep both TensorCores busy on dual-core chips (v7x).
        if self._dual_core and (Mp // tm) * (Np // tn) == 1 and tn >= 256 and (tn // 2) % 128 == 0:
            tn = tn // 2

        grid = (Mp // tm, Np // tn, Kp // tk)
        fuse_out = (jnp.dtype(out_dtype) == jnp.dtype(jnp.float32))

        in_specs = [
            pl.BlockSpec((tm, tk), lambda i, j, k: (i, k)),   # x tile
            pl.BlockSpec((tk, tn), lambda i, j, k: (k, j)),   # W^T tile (MXU-native)
        ]
        operands = [x, self.weight_t]
        if self.use_bias:
            in_specs.append(pl.BlockSpec((1, tn), lambda i, j, k: (0, j)))
            operands.append(self.bias2d)

        scratch_shapes = [] if fuse_out else [pltpu.VMEM((tm, tn), jnp.float32)]

        # VMEM limit from the actual working set (double-buffered), capped for v7x.
        out_itemsize = jnp.dtype(out_dtype).itemsize
        ws = 2 * (tm * tk + tk * tn) * self._in_itemsize
        ws += 2 * tm * tn * out_itemsize
        if not fuse_out:
            ws += tm * tn * 4
        if self.use_bias:
            ws += 2 * tn * 4
        vmem_limit = int(min(_VMEM_LIMIT_CAP, max(32 * 1024 * 1024, 2 * ws)))

        transcendental_acts = ("tanh", "sigmoid", "swish")
        cost = pl.CostEstimate(
            flops=2 * Mp * Np * Kp,
            transcendentals=(Mp * Np) if self.act_func in transcendental_acts else 0,
            bytes_accessed=(Mp * Kp * (Np // tn)            # x re-read per N block
                            + Np * Kp * (Mp // tm)          # W re-read per M block
                            + (Np * (Mp // tm) * 4 if self.use_bias else 0)
                            ) * 1 * self._in_itemsize
                           + Mp * Np * out_itemsize)

        kernel = functools.partial(_linear_kernel, act_func=self.act_func,
                                   use_bias=self.use_bias, fuse_out=fuse_out)

        out = pl.pallas_call(
            kernel,
            out_shape=jax.ShapeDtypeStruct((Mp, Np), out_dtype),
            grid_spec=pltpu.PrefetchScalarGridSpec(
                num_scalar_prefetch=0,
                grid=grid,
                in_specs=in_specs,
                out_specs=pl.BlockSpec((tm, tn), lambda i, j, k: (i, j)),
                scratch_shapes=scratch_shapes,
            ),
            compiler_params=pltpu.CompilerParams(
                dimension_semantics=("parallel", "parallel", "arbitrary"),
                vmem_limit_bytes=vmem_limit),
            cost_estimate=cost,
        )(*operands)

        if (Mp, Np) != (B, out_f):
            out = out[:B, :out_f]
        return out


if __name__ == "__main__":
    # Small shapes consistent with nn.Linear(in_features=32, out_features=64).
    B, IN_F, OUT_F = 8, 32, 64

    key = jax.random.PRNGKey(0)
    kx, kw, kb = jax.random.split(key, 3)

    bound = 1.0 / (IN_F ** 0.5)
    x = jax.random.normal(kx, (B, IN_F), dtype=jnp.float32)
    weight = jax.random.uniform(kw, (OUT_F, IN_F), dtype=jnp.float32,
                                minval=-bound, maxval=bound)
    bias = jax.random.uniform(kb, (OUT_F,), dtype=jnp.float32,
                              minval=-bound, maxval=bound)

    y_ref = x @ weight.T + bias

    # Default LinearLayer: act_func=None  ->  y = x @ W^T + b  (f32 path,
    # accumulates directly into the output block).
    layer = PallasLinearLayer(weight, bias, act_func=None)
    y = jax.block_until_ready(layer(x))
    assert y.shape == (B, OUT_F)
    assert jnp.allclose(y, y_ref, atol=1e-4, rtol=1e-4), "mismatch vs reference"

    # Fused activation (build_activation('h_swish') applied after the linear).
    layer_hswish = PallasLinearLayer(weight, bias, act_func="h_swish")
    y2 = jax.block_until_ready(layer_hswish(x))
    y2_ref = y_ref * (jnp.clip(y_ref + 3.0, 0.0, 6.0) / 6.0)
    assert jnp.allclose(y2, y2_ref, atol=1e-4, rtol=1e-4), "mismatch (h_swish)"

    # No-bias path (bias operand / BlockSpec omitted entirely).
    layer_nb = PallasLinearLayer(weight, None, act_func=None)
    y3 = jax.block_until_ready(layer_nb(x))
    assert jnp.allclose(y3, x @ weight.T, atol=1e-4, rtol=1e-4), "mismatch (no bias)"

    # bf16 compute path (weight pre-cast once at init, f32 accumulation).
    layer_bf16 = PallasLinearLayer(weight, bias, act_func=None,
                                   compute_dtype=jnp.bfloat16)
    y4 = jax.block_until_ready(layer_bf16(x))
    assert jnp.allclose(y4, y_ref, atol=5e-2, rtol=5e-2), "mismatch (bf16 compute)"

    print("KERNEL_OK")
</pallas_src>

<mosaic_0001>
module attributes {stable_mosaic.version = 11 : i64} {
  func.func @_linear_kernel(%arg0: i32, %arg1: i32, %arg2: i32, %arg3: memref<8x128xf32, #tpu.memory_space<vmem>>, %arg4: memref<128x128xf32, #tpu.memory_space<vmem>>, %arg5: memref<1x128xf32, #tpu.memory_space<vmem>>, %arg6: memref<8x128xf32, #tpu.memory_space<vmem>>) attributes {dimension_semantics = [#tpu.dimension_semantics<parallel>, #tpu.dimension_semantics<parallel>, #tpu.dimension_semantics<arbitrary>], iteration_bounds = array<i64: 1, 1, 1>, scalar_prefetch = 0 : i64, scratch_operands = 0 : i64, tpu.core_type = #tpu.core_type<tc>, window_params = [{transform_indices = @transform_0, window_bounds = array<i64: 8, 128>}, {transform_indices = @transform_1, window_bounds = array<i64: 128, 128>}, {transform_indices = @transform_2, window_bounds = array<i64: 1, 128>}, {transform_indices = @transform_3, window_bounds = array<i64: 8, 128>}]} {
    %c0_i32 = arith.constant 0 : i32
    %0 = arith.cmpi eq, %arg2, %c0_i32 : i32
    %1 = arith.extui %0 : i1 to i32
    %c0_i32_0 = arith.constant 0 : i32
    %2 = arith.cmpi ne, %1, %c0_i32_0 : i32
    scf.if %2 {
      %cst_10 = arith.constant 0.000000e+00 : f32
      %12 = vector.broadcast %cst_10 : f32 to vector<8x128xf32>
      %c0_11 = arith.constant 0 : index
      %c0_12 = arith.constant 0 : index
      %13 = vector.load %arg6[%c0_11, %c0_12] : memref<8x128xf32, #tpu.memory_space<vmem>>, vector<8x128xf32>
      tpu.vector_store %arg6[%c0_11, %c0_12], %12 {strides = array<i32>} : memref<8x128xf32, #tpu.memory_space<vmem>>, vector<8x128xf32>,
    } else {
    }
    %c0 = arith.constant 0 : index
    %c0_1 = arith.constant 0 : index
    %3 = vector.load %arg6[%c0, %c0_1] : memref<8x128xf32, #tpu.memory_space<vmem>>, vector<8x128xf32>
    %c0_2 = arith.constant 0 : index
    %c0_3 = arith.constant 0 : index
    %4 = vector.load %arg3[%c0_2, %c0_3] : memref<8x128xf32, #tpu.memory_space<vmem>>, vector<8x128xf32>
    %c0_4 = arith.constant 0 : index
    %c0_5 = arith.constant 0 : index
    %5 = vector.load %arg4[%c0_4, %c0_5] : memref<128x128xf32, #tpu.memory_space<vmem>>, vector<128x128xf32>
    %cst = arith.constant dense<0.000000e+00> : vector<8x128xf32>
    %6 = tpu.matmul %4, %5, %cst {dimension_numbers = #tpu.dot_dimension_numbers<[1], [0], [0], [1], [0, 0, 1, 1], [], []>} : vector<8x128xf32>, vector<128x128xf32>, vector<8x128xf32> -> vector<8x128xf32>
    %7 = arith.addf %3, %6 : vector<8x128xf32>
    %c0_6 = arith.constant 0 : index
    %c0_7 = arith.constant 0 : index
    %8 = vector.load %arg6[%c0_6, %c0_7] : memref<8x128xf32, #tpu.memory_space<vmem>>, vector<8x128xf32>
    tpu.vector_store %arg6[%c0_6, %c0_7], %7 {strides = array<i32>} : memref<8x128xf32, #tpu.memory_space<vmem>>, vector<8x128xf32>,
    %c0_i32_8 = arith.constant 0 : i32
    %9 = arith.cmpi eq, %arg2, %c0_i32_8 : i32
    %10 = arith.extui %9 : i1 to i32
    %c0_i32_9 = arith.constant 0 : i32
    %11 = arith.cmpi ne, %10, %c0_i32_9 : i32
    scf.if %11 {
      %c0_10 = arith.constant 0 : index
      %c0_11 = arith.constant 0 : index
      %12 = vector.load %arg6[%c0_10, %c0_11] : memref<8x128xf32, #tpu.memory_space<vmem>>, vector<8x128xf32>
      %c0_12 = arith.constant 0 : index
      %c0_13 = arith.constant 0 : index
      %13 = vector.load %arg5[%c0_12, %c0_13] : memref<1x128xf32, #tpu.memory_space<vmem>>, vector<1x128xf32>
      %14 = vector.broadcast %13 : vector<1x128xf32> to vector<8x128xf32>
      %15 = arith.addf %12, %14 : vector<8x128xf32>
      %c0_14 = arith.constant 0 : index
      %c0_15 = arith.constant 0 : index
      %16 = vector.load %arg6[%c0_14, %c0_15] : memref<8x128xf32, #tpu.memory_space<vmem>>, vector<8x128xf32>
      tpu.vector_store %arg6[%c0_14, %c0_15], %15 {strides = array<i32>} : memref<8x128xf32, #tpu.memory_space<vmem>>, vector<8x128xf32>,
    } else {
    }
    return
  }
  func.func @transform_0(%arg0: i32, %arg1: i32, %arg2: i32) -> (i32, i32) {
    %c0_i32 = arith.constant 0 : i32
    return %arg0, %arg2 : i32, i32
  }
  func.func @transform_1(%arg0: i32, %arg1: i32, %arg2: i32) -> (i32, i32) {
    %c0_i32 = arith.constant 0 : i32
    return %arg2, %arg1 : i32, i32
  }
  func.func @transform_2(%arg0: i32, %arg1: i32, %arg2: i32) -> (i32, i32) {
    %c0_i32 = arith.constant 0 : i32
    %c0_i32_0 = arith.constant 0 : i32
    return %c0_i32, %arg1 : i32, i32
  }
  func.func @transform_3(%arg0: i32, %arg1: i32, %arg2: i32) -> (i32, i32) {
    %c0_i32 = arith.constant 0 : i32
    return %arg0, %arg1 : i32, i32
  }
}

</mosaic_0001>

<bundles_post_ra>
// kernel: tpu_custom_call.1
= control target key start
LH: loop header
LB: loop body
LE: loop exit
PB: predicated region body
PF: predicated region fallthrough
CT: control target
= control target key end

     0   :  { %8 = vsyncpa [#allocation3], 0  ;;  %s330_s0 = inlined_call_operand.hbm [shape: f32[8,128], index: 0, kind: input, shape index: {}]   ;;  %s331_s1 = inlined_call_operand.hbm [shape: f32[128,128], index: 1, kind: input, shape index: {}]   ;;  %s332_s2 = inlined_call_operand.vmem [shape: f32[1,128], index: 2, kind: input, shape index: {}]   ;;  %s333_s3 = inlined_call_operand.hbm [shape: f32[8,128], index: 3, kind: output, shape index: {}]  }
   0x1   :  { %9 = vsyncpa [#allocation6], 0 }
   0x2   :  { %10 = vsyncpa [#allocation4], 0  ;;  %s291_s12 = smov [#allocation2]   ;;  %s292_s14 = smov [#allocation5]  }
   0x3   :  { %s17_s13 = sshll.u32 %s291_s12, 4  ;;  %s26_s15 = sshll.u32 %s292_s14, 4  ;;  %s18_s13 = int_to_ptr.vmem [resolvable:$true] %s17_s13  ;;  %s27_s15 = int_to_ptr.vmem [resolvable:$true] %s26_s15 }
   0x4   :  { %s233_s16 = scalar_lea.vmem %s18_s13, 128  ;;  %p238_p1 = scmp.lt.s32.totalorder %s18_s13, %s18_s13 }
   0x5   :  { %p234_p0 = scmp.ne.s32.totalorder %s18_s13, %s233_s16  ;;  %p239_p2 = scmp.lt.s32.totalorder %s233_s16, %s233_s16 }
   0x7   :  { %p240_p3 = por %p239_p2, %p238_p1 }
   0x9   :  { %p241_p4 = pnand %p240_p3, %p234_p0 }
   0xb   :  { %244 = shalt.err (!%p241_p4)
}
   0xc   :  { %20 = dma.hbm_to_vmem [thread:$0]  %s330_s0, 128, %s18_s13, [#allocation3]  }
   0xd   :  { %s253_s19 = scalar_lea.vmem %s27_s15, 2048  ;;  %p258_p6 = scmp.lt.s32.totalorder %s27_s15, %s27_s15 }
   0xe   :  { %p254_p5 = scmp.ne.s32.totalorder %s27_s15, %s253_s19  ;;  %p259_p7 = scmp.lt.s32.totalorder %s253_s19, %s253_s19 }
  0x10   :  { %p260_p8 = por %p259_p7, %p258_p6 }
  0x12   :  { %p261_p9 = pnand %p260_p8, %p254_p5 }
  0x14   :  { %264 = shalt.err (!%p261_p9)
}
  0x15   :  { %s293_s20 = smov 128   ;;  %s294_s21 = smov 8  }
  0x16   :  { %32 = dma.hbm_to_vmem [thread:$0]  %s331_s1, 2048, %s27_s15, [#allocation6], %s293_s20, %s293_s20, %s294_s21  }
  0x17   :  { %285 = dma.done.wait [#allocation3], 128  }
  0x18   :  { %286 = vsyncadd [#allocation3], 4294967168 }
  0x19   :  { %287 = dma.done.wait [#allocation6], 2048  }
  0x1a   :  { %288 = vsyncadd [#allocation6], 4294965248  ;;  %v295_v0 = vmov 0.0   ;;  %vm296_vm0 = vmmov 0   ;;  %v63_v1 = vld [vmem:[#allocation5 + $0x78] sm:$0xff]  ;;  %v62_v2 = vld [vmem:[#allocation5 + $0x70] sm:$0xff] }
  0x1b   :  { %183 = vmatprep.subr.mxu0 %v295_v0  ;;  %215 = vmatprep.mubr.msk.f32.mxu0 %vm296_vm0, %v295_v0  ;;  %v61_v3 = vld [vmem:[#allocation5 + $0x68] sm:$0xff]  ;;  %v60_v4 = vld [vmem:[#allocation5 + $0x60] sm:$0xff]  ;;  %v59_v5 = vld [vmem:[#allocation5 + $0x58] sm:$0xff]  ;;  %s297_s24 = smov [#allocation7]  }
  0x1c   :  { %184 = vmatpush3.msra.mxu0 %v63_v1  ;;  %v58_v6 = vld [vmem:[#allocation5 + $0x50] sm:$0xff]  ;;  %v57_v7 = vld [vmem:[#allocation5 + $0x48] sm:$0xff]  ;;  %v56_v8 = vld [vmem:[#allocation5 + $0x40] sm:$0xff]  ;;  %s155_s25 = sshll.u32 %s297_s24, 4  ;;  %s156_s25 = int_to_ptr.vmem [resolvable:$true] %s155_s25 }
  0x1d   :  { %185 = vmatprep.subr.mxu0 %v295_v0  ;;  %v55_v9 = vld [vmem:[#allocation5 + $0x38] sm:$0xff]  ;;  %v54_v10 = vld [vmem:[#allocation5 + $0x30] sm:$0xff]  ;;  %v53_v11 = vld [vmem:[#allocation5 + $0x28] sm:$0xff]  ;;  %s265_s26 = scalar_lea.vmem %s156_s25, 128  ;;  %p270_p11 = scmp.lt.s32.totalorder %s156_s25, %s156_s25 }
  0x1e   :  { %186 = vmatpush3.msra.mxu0 %v62_v2  ;;  %v52_v12 = vld [vmem:[#allocation5 + $0x20] sm:$0xff]  ;;  %v51_v13 = vld [vmem:[#allocation5 + $0x18] sm:$0xff]  ;;  %v50_v14 = vld [vmem:[#allocation5 + $0x10] sm:$0xff]  ;;  %p266_p10 = scmp.ne.s32.totalorder %s156_s25, %s265_s26  ;;  %p271_p12 = scmp.lt.s32.totalorder %s265_s26, %s265_s26 }
  0x1f   :  { %187 = vmatprep.subr.mxu0 %v295_v0  ;;  %v49_v15 = vld [vmem:[#allocation5 + $0x8] sm:$0xff]  ;;  %v48_v16 = vld [vmem:[#allocation5] sm:$0xff]  ;;  %v47_v17 = vld [vmem:[#allocation2] sm:$0xff] }
  0x20   :  { %188 = vmatpush3.msra.mxu0 %v61_v3  ;;  %v165_v19 = vld [vmem:[%s332_s2] ss:$0 sm:$0xff]  ;;  %p272_p13 = por %p271_p12, %p270_p11 }
  0x21   :  { %189 = vmatprep.subr.mxu0 %v295_v0 }
  0x22   :  { %190 = vmatpush3.msra.mxu0 %v60_v4  ;;  %p273_p0 = pnand %p272_p13, %p266_p10 }
  0x23   :  { %191 = vmatprep.subr.mxu0 %v295_v0 }
  0x24   :  { %192 = vmatpush3.msra.mxu0 %v59_v5 }
  0x25   :  { %193 = vmatprep.subr.mxu0 %v295_v0 }
  0x26   :  { %194 = vmatpush3.msra.mxu0 %v58_v6 }
  0x27   :  { %195 = vmatprep.subr.mxu0 %v295_v0 }
  0x28   :  { %196 = vmatpush3.msra.mxu0 %v57_v7 }
  0x29   :  { %197 = vmatprep.subr.mxu0 %v295_v0 }
  0x2a   :  { %198 = vmatpush3.msra.mxu0 %v56_v8 }
  0x2b   :  { %199 = vmatprep.subr.mxu0 %v295_v0 }
  0x2c   :  { %200 = vmatpush3.msra.mxu0 %v55_v9 }
  0x2d   :  { %201 = vmatprep.subr.mxu0 %v295_v0 }
  0x2e   :  { %202 = vmatpush3.msra.mxu0 %v54_v10 }
  0x2f   :  { %203 = vmatprep.subr.mxu0 %v295_v0 }
  0x30   :  { %204 = vmatpush3.msra.mxu0 %v53_v11 }
  0x31   :  { %205 = vmatprep.subr.mxu0 %v295_v0 }
  0x32   :  { %206 = vmatpush3.msra.mxu0 %v52_v12 }
  0x33   :  { %207 = vmatprep.subr.mxu0 %v295_v0 }
  0x34   :  { %208 = vmatpush3.msra.mxu0 %v51_v13 }
  0x35   :  { %209 = vmatprep.subr.mxu0 %v295_v0 }
  0x36   :  { %210 = vmatpush3.msra.mxu0 %v50_v14 }
  0x37   :  { %211 = vmatprep.subr.mxu0 %v295_v0 }
  0x38   :  { %212 = vmatpush3.msra.mxu0 %v49_v15 }
  0x39   :  { %213 = vmatprep.subr.mxu0 %v295_v0 }
  0x3a   :  { %214 = vmatpush3.msra.mxu0 %v48_v16 }
  0x3b   :  { %216 = vmatmul.mubr.f32.vlgmr.msra.gmra.mxu0 %v47_v17 }
  0xfb   :  { %v130_v18 = vpop.f32.mrf.mxu0 }
  0xfc   :  { %v147_v21 = vadd.f32 %v165_v19, %v130_v18 }
  0xfd   :  { %v217_v20 = vpop.f32.mrf.mxu0 }
  0xfe   :  { %148 = vst [vmem:[#allocation7] sm:$0xff] %v147_v21 }
  0xff   :  { %276 = shalt.err (!%p273_p0)
}
 0x100   :  { %158 = dma.vmem_to_hbm [thread:$0]  %s156_s25, 128, %s333_s3, [#allocation4]  }
 0x101   :  { %289 = dma.done.wait [#allocation4], 128  }
 0x102   :  { %290 = vsyncadd [#allocation4], 4294967168 }
 0x103   :  { %162 = vsyncpa [#allocation3], 1 }
 0x104   :  { %163 = vsyncpa [#allocation6], 1 }
 0x105   :  { %164 = vsyncpa [#allocation4], 1 }

</bundles_post_ra>
